<compile_context>
chip_gen: v6e
topology: v6e:2x2x1
jax: 0.10.0
libtpu: 0.0.40
codegen_flags: <defaults>
</compile_context>

<pallas_src>
import functools
from math import sqrt

import jax
import jax.numpy as jnp
from jax.experimental import pallas as pl
from jax.experimental.pallas import tpu as pltpu


def _mha_kernel(x_ref, w_ref, o_ref, *, num_heads, seq_len, dim_k, dim_v):
    # x_ref: (TB*n, din) bf16   -- TB batch elements, rows pre-flattened
    # w_ref: (din, 2*dim_k + dim_v) bf16 packed [q*scale | k | v] weights
    # o_ref: (TB, n, dim_v) bf16 output block
    n = seq_len
    tb = x_ref.shape[0] // n
    din = x_ref.shape[1]
    nh = num_heads
    dk = dim_k // nh
    dv = dim_v // nh

    x = x_ref[...]                               # bf16, no in-kernel cast
    w = w_ref[...]                               # bf16, VMEM-resident

    # Single fused, wide QKV projection on the MXU (f32 accumulation),
    # M = TB * n rows.
    qkv = jnp.dot(x, w, preferred_element_type=jnp.float32)       # (TB*n, 2K+V)
    # Split the batch tile back out while still f32 (8-sublane aligned for
    # n % 8 == 0), then do ONE wide lane-dense bf16 cast.
    qkv = qkv.reshape(tb, n, 2 * dim_k + dim_v).astype(jnp.bfloat16)

    head_outs = []
    for h in range(nh):                          # nh is small -> traced unroll
        # q columns already carry the 1/sqrt(dk) scale (folded into weights).
        q_h = qkv[:, :, h * dk:(h + 1) * dk]                              # (TB, n, dk)
        k_h = qkv[:, :, dim_k + h * dk:dim_k + (h + 1) * dk]              # (TB, n, dk)
        v_h = qkv[:, :, 2 * dim_k + h * dv:2 * dim_k + (h + 1) * dv]      # (TB, n, dv)

        # Scores batched over the batch tile; contract last dims
        # (no materialized k transpose).
        s = jnp.einsum("bqd,bkd->bqk", q_h, k_h,
                       preferred_element_type=jnp.float32)                # (TB, n, n) f32

        # Numerically-stable softmax over keys; statistics stay in f32.
        s = s - jnp.max(s, axis=-1, keepdims=True)
        p = jnp.exp(s)
        p = p * pl.reciprocal(jnp.sum(p, axis=-1, keepdims=True), approx=True)

        o_h = jnp.einsum("bqk,bkd->bqd", p.astype(jnp.bfloat16), v_h,
                         preferred_element_type=jnp.float32)              # (TB, n, dv)
        # Cast immediately: only bf16 head tiles stay live up to the store.
        head_outs.append(o_h.astype(o_ref.dtype))

    # Heads concatenated along the lane dim == torch's
    # transpose(1, 2).reshape(batch, n, dim_v).
    o_ref[...] = jnp.concatenate(head_outs, axis=-1)


def pack_qkv_weights(wq, wk, wv, *, num_heads):
    """Pack PyTorch nn.Linear weights (out_dim, in_dim), bias=False, into one
    (dim_input, 2*dim_k + dim_v) bf16 matrix with the 1/sqrt(dk) attention
    scale folded into the q columns.  Call ONCE, outside the hot path."""
    dim_k = wq.shape[0]
    dk = dim_k // num_heads
    scale = 1.0 / sqrt(dk)
    w = jnp.concatenate([wq.T * scale, wk.T, wv.T], axis=1)
    return w.astype(jnp.bfloat16)


def multi_head_attention(x, w_qkv, *, num_heads, dim_k, dim_v, block_batch=None):
    """x: (batch, n, dim_input); w_qkv: packed weights from pack_qkv_weights().
    Returns (batch, n, dim_v) in bf16 (cast outside if f32 is required)."""
    batch, n, din = x.shape

    if block_batch is None:
        # Amortize the fixed per-grid-step cost by processing several batch
        # elements per step; cap the tile so large batches still expose >= 2
        # parallel grid steps (v7x has 2 TensorCores).
        if batch <= 8:
            block_batch = batch
        else:
            block_batch = next(tb for tb in (8, 4, 2, 1) if batch % tb == 0)
    assert batch % block_batch == 0, "batch must be divisible by block_batch"
    # Keep the flattened-row BlockSpec legal ((TB*n) rows must be 8-aligned
    # whenever the grid has more than one step).
    if batch // block_batch > 1 and (block_batch * n) % 8 != 0:
        block_batch = batch
    grid = (batch // block_batch,)

    # bf16 activations into the kernel (half the input DMA bytes, no per-step
    # in-kernel cast); flatten (batch, n) -> rows so the kernel's QKV matmul
    # sees a single tall M dimension.  Both are cheap wrapper-side layout ops.
    x_flat = x.astype(jnp.bfloat16).reshape(batch * n, din)

    kernel = functools.partial(
        _mha_kernel, num_heads=num_heads, seq_len=n, dim_k=dim_k, dim_v=dim_v)

    return pl.pallas_call(
        kernel,
        out_shape=jax.ShapeDtypeStruct((batch, n, dim_v), jnp.bfloat16),
        grid_spec=pltpu.PrefetchScalarGridSpec(
            num_scalar_prefetch=0,
            grid=grid,
            in_specs=[
                pl.BlockSpec((block_batch * n, din), lambda b: (b, 0)),
                # Constant index_map: packed weights DMA'd once and resident in
                # VMEM for every grid step (no per-step weight traffic).
                pl.BlockSpec((din, 2 * dim_k + dim_v), lambda b: (0, 0)),
            ],
            out_specs=pl.BlockSpec((block_batch, n, dim_v), lambda b: (b, 0, 0)),
        ),
        compiler_params=pltpu.CompilerParams(
            dimension_semantics=("parallel",),
            # Safe on v5e/v6e/v7x at these sizes (v5e default is only 16 MiB).
            # On v6e (128 MiB VMEM) raise toward ~100 MiB for large n/din
            # before switching to flash-style KV tiling.
            vmem_limit_bytes=32 * 1024 * 1024,
        ),
    )(x_flat, w_qkv)


def _reference(x, wq, wk, wv, *, num_heads):
    """Pure-JAX f32 reference mirroring the PyTorch module's forward."""
    batch, n, din = x.shape
    dim_k = wq.shape[0]
    dim_v = wv.shape[0]
    nh = num_heads
    dk = dim_k // nh
    dv = dim_v // nh
    q = (x @ wq.T).reshape(batch, n, nh, dk).transpose(0, 2, 1, 3)
    k = (x @ wk.T).reshape(batch, n, nh, dk).transpose(0, 2, 1, 3)
    v = (x @ wv.T).reshape(batch, n, nh, dv).transpose(0, 2, 1, 3)
    dist = jnp.einsum("bhqd,bhkd->bhqk", q, k) / sqrt(dk)
    dist = jax.nn.softmax(dist, axis=-1)
    att = jnp.einsum("bhqk,bhkd->bhqd", dist, v)
    return att.transpose(0, 2, 1, 3).reshape(batch, n, dim_v)


if __name__ == "__main__":
    # Small shapes consistent with the module's forward.
    batch, n, dim_input = 2, 8, 32
    dim_k, dim_v, num_heads = 32, 32, 4

    key = jax.random.PRNGKey(0)
    kx, kq, kk, kv = jax.random.split(key, 4)

    x = jax.random.normal(kx, (batch, n, dim_input), dtype=jnp.float32)
    # nn.Linear(bias=False) style init: U(-1/sqrt(fan_in), 1/sqrt(fan_in)).
    bound = 1.0 / sqrt(dim_input)
    wq = jax.random.uniform(kq, (dim_k, dim_input), jnp.float32, -bound, bound)
    wk = jax.random.uniform(kk, (dim_k, dim_input), jnp.float32, -bound, bound)
    wv = jax.random.uniform(kv, (dim_v, dim_input), jnp.float32, -bound, bound)

    # Pack (and scale) the projection weights once, outside the hot path.
    w_qkv = pack_qkv_weights(wq, wk, wv, num_heads=num_heads)

    out = multi_head_attention(x, w_qkv, num_heads=num_heads,
                               dim_k=dim_k, dim_v=dim_v)
    out = jax.block_until_ready(out)

    ref = _reference(x, wq, wk, wv, num_heads=num_heads)
    assert out.shape == (batch, n, dim_v)
    # bf16 activations/weights/output with f32 accumulation & f32 softmax stats.
    assert jnp.allclose(out.astype(jnp.float32), ref, atol=3e-2, rtol=3e-2)

    print("KERNEL_OK")
</pallas_src>

<mosaic_0001>
module attributes {stable_mosaic.version = 11 : i64} {
  func.func @_mha_kernel(%arg0: i32, %arg1: memref<16x32xbf16, #tpu.memory_space<vmem>>, %arg2: memref<32x96xbf16, #tpu.memory_space<vmem>>, %arg3: memref<2x8x32xbf16, #tpu.memory_space<vmem>>) attributes {dimension_semantics = [#tpu.dimension_semantics<parallel>], iteration_bounds = array<i64: 1>, scalar_prefetch = 0 : i64, scratch_operands = 0 : i64, tpu.core_type = #tpu.core_type<tc>, window_params = [{transform_indices = @transform_0, window_bounds = array<i64: 16, 32>}, {pipeline_mode = #tpu.pipeline_mode<synchronous>, transform_indices = @transform_1, window_bounds = array<i64: 32, 96>}, {transform_indices = @transform_2, window_bounds = array<i64: 2, 8, 32>}]} {
    %c0 = arith.constant 0 : index
    %c0_0 = arith.constant 0 : index
    %0 = vector.load %arg1[%c0, %c0_0] : memref<16x32xbf16, #tpu.memory_space<vmem>>, vector<16x32xbf16>
    %c0_1 = arith.constant 0 : index
    %c0_2 = arith.constant 0 : index
    %1 = vector.load %arg2[%c0_1, %c0_2] : memref<32x96xbf16, #tpu.memory_space<vmem>>, vector<32x96xbf16>
    %cst = arith.constant dense<0.000000e+00> : vector<16x96xf32>
    %2 = tpu.matmul %0, %1, %cst {dimension_numbers = #tpu.dot_dimension_numbers<[1], [0], [0], [1], [0, 0, 1, 1], [], []>} : vector<16x32xbf16>, vector<32x96xbf16>, vector<16x96xf32> -> vector<16x96xf32>
    %3 = vector.shape_cast %2 : vector<16x96xf32> to vector<2x8x96xf32>
    %4 = arith.truncf %3 : vector<2x8x96xf32> to vector<2x8x96xbf16>
    %5 = vector.extract_strided_slice %4 {offsets = [0, 0, 0], sizes = [2, 8, 8], strides = [1, 1, 1]} : vector<2x8x96xbf16> to vector<2x8x8xbf16>
    %6 = vector.extract_strided_slice %4 {offsets = [0, 0, 32], sizes = [2, 8, 8], strides = [1, 1, 1]} : vector<2x8x96xbf16> to vector<2x8x8xbf16>
    %7 = vector.extract_strided_slice %4 {offsets = [0, 0, 64], sizes = [2, 8, 8], strides = [1, 1, 1]} : vector<2x8x96xbf16> to vector<2x8x8xbf16>
    "tpu.trace_start"() <{level = 10 : i32, message = "bqd,bkd->bqk"}> : () -> ()
    %cst_3 = arith.constant dense<0.000000e+00> : vector<2x8x8xf32>
    %8 = tpu.matmul %5, %6, %cst_3 {dimension_numbers = #tpu.dot_dimension_numbers<[2], [2], [1], [1], [0, 0, 0, 1, 1, 1], [0], [0]>} : vector<2x8x8xbf16>, vector<2x8x8xbf16>, vector<2x8x8xf32> -> vector<2x8x8xf32>
    "tpu.trace_stop"() : () -> ()
    %cst_4 = arith.constant dense<0xFF800000> : vector<2x8xf32>
    %9 = vector.multi_reduction <maximumf>, %8, %cst_4 [2] : vector<2x8x8xf32> to vector<2x8xf32>
    %10 = vector.shape_cast %9 : vector<2x8xf32> to vector<2x8x1xf32>
    %11 = vector.broadcast %10 : vector<2x8x1xf32> to vector<2x8x8xf32>
    %12 = arith.subf %8, %11 : vector<2x8x8xf32>
    %13 = math.exp %12 : vector<2x8x8xf32>
    %cst_5 = arith.constant dense<0.000000e+00> : vector<2x8xf32>
    %14 = vector.multi_reduction <add>, %13, %cst_5 [2] : vector<2x8x8xf32> to vector<2x8xf32>
    %15 = vector.shape_cast %14 : vector<2x8xf32> to vector<2x8x1xf32>
    %16 = tpu.reciprocal %15 {approx = true} : vector<2x8x1xf32> -> vector<2x8x1xf32>
    %17 = vector.broadcast %16 : vector<2x8x1xf32> to vector<2x8x8xf32>
    %18 = arith.mulf %13, %17 : vector<2x8x8xf32>
    %19 = arith.truncf %18 : vector<2x8x8xf32> to vector<2x8x8xbf16>
    "tpu.trace_start"() <{level = 10 : i32, message = "bqk,bkd->bqd"}> : () -> ()
    %cst_6 = arith.constant dense<0.000000e+00> : vector<2x8x8xf32>
    %20 = tpu.matmul %19, %7, %cst_6 {dimension_numbers = #tpu.dot_dimension_numbers<[2], [1], [1], [2], [0, 0, 0, 1, 1, 2], [0], [0]>} : vector<2x8x8xbf16>, vector<2x8x8xbf16>, vector<2x8x8xf32> -> vector<2x8x8xf32>
    "tpu.trace_stop"() : () -> ()
    %21 = arith.truncf %20 : vector<2x8x8xf32> to vector<2x8x8xbf16>
    %22 = vector.extract_strided_slice %4 {offsets = [0, 0, 8], sizes = [2, 8, 8], strides = [1, 1, 1]} : vector<2x8x96xbf16> to vector<2x8x8xbf16>
    %23 = vector.extract_strided_slice %4 {offsets = [0, 0, 40], sizes = [2, 8, 8], strides = [1, 1, 1]} : vector<2x8x96xbf16> to vector<2x8x8xbf16>
    %24 = vector.extract_strided_slice %4 {offsets = [0, 0, 72], sizes = [2, 8, 8], strides = [1, 1, 1]} : vector<2x8x96xbf16> to vector<2x8x8xbf16>
    "tpu.trace_start"() <{level = 10 : i32, message = "bqd,bkd->bqk"}> : () -> ()
    %cst_7 = arith.constant dense<0.000000e+00> : vector<2x8x8xf32>
    %25 = tpu.matmul %22, %23, %cst_7 {dimension_numbers = #tpu.dot_dimension_numbers<[2], [2], [1], [1], [0, 0, 0, 1, 1, 1], [0], [0]>} : vector<2x8x8xbf16>, vector<2x8x8xbf16>, vector<2x8x8xf32> -> vector<2x8x8xf32>
    "tpu.trace_stop"() : () -> ()
    %cst_8 = arith.constant dense<0xFF800000> : vector<2x8xf32>
    %26 = vector.multi_reduction <maximumf>, %25, %cst_8 [2] : vector<2x8x8xf32> to vector<2x8xf32>
    %27 = vector.shape_cast %26 : vector<2x8xf32> to vector<2x8x1xf32>
    %28 = vector.broadcast %27 : vector<2x8x1xf32> to vector<2x8x8xf32>
    %29 = arith.subf %25, %28 : vector<2x8x8xf32>
    %30 = math.exp %29 : vector<2x8x8xf32>
    %cst_9 = arith.constant dense<0.000000e+00> : vector<2x8xf32>
    %31 = vector.multi_reduction <add>, %30, %cst_9 [2] : vector<2x8x8xf32> to vector<2x8xf32>
    %32 = vector.shape_cast %31 : vector<2x8xf32> to vector<2x8x1xf32>
    %33 = tpu.reciprocal %32 {approx = true} : vector<2x8x1xf32> -> vector<2x8x1xf32>
    %34 = vector.broadcast %33 : vector<2x8x1xf32> to vector<2x8x8xf32>
    %35 = arith.mulf %30, %34 : vector<2x8x8xf32>
    %36 = arith.truncf %35 : vector<2x8x8xf32> to vector<2x8x8xbf16>
    "tpu.trace_start"() <{level = 10 : i32, message = "bqk,bkd->bqd"}> : () -> ()
    %cst_10 = arith.constant dense<0.000000e+00> : vector<2x8x8xf32>
    %37 = tpu.matmul %36, %24, %cst_10 {dimension_numbers = #tpu.dot_dimension_numbers<[2], [1], [1], [2], [0, 0, 0, 1, 1, 2], [0], [0]>} : vector<2x8x8xbf16>, vector<2x8x8xbf16>, vector<2x8x8xf32> -> vector<2x8x8xf32>
    "tpu.trace_stop"() : () -> ()
    %38 = arith.truncf %37 : vector<2x8x8xf32> to vector<2x8x8xbf16>
    %39 = vector.extract_strided_slice %4 {offsets = [0, 0, 16], sizes = [2, 8, 8], strides = [1, 1, 1]} : vector<2x8x96xbf16> to vector<2x8x8xbf16>
    %40 = vector.extract_strided_slice %4 {offsets = [0, 0, 48], sizes = [2, 8, 8], strides = [1, 1, 1]} : vector<2x8x96xbf16> to vector<2x8x8xbf16>
    %41 = vector.extract_strided_slice %4 {offsets = [0, 0, 80], sizes = [2, 8, 8], strides = [1, 1, 1]} : vector<2x8x96xbf16> to vector<2x8x8xbf16>
    "tpu.trace_start"() <{level = 10 : i32, message = "bqd,bkd->bqk"}> : () -> ()
    %cst_11 = arith.constant dense<0.000000e+00> : vector<2x8x8xf32>
    %42 = tpu.matmul %39, %40, %cst_11 {dimension_numbers = #tpu.dot_dimension_numbers<[2], [2], [1], [1], [0, 0, 0, 1, 1, 1], [0], [0]>} : vector<2x8x8xbf16>, vector<2x8x8xbf16>, vector<2x8x8xf32> -> vector<2x8x8xf32>
    "tpu.trace_stop"() : () -> ()
    %cst_12 = arith.constant dense<0xFF800000> : vector<2x8xf32>
    %43 = vector.multi_reduction <maximumf>, %42, %cst_12 [2] : vector<2x8x8xf32> to vector<2x8xf32>
    %44 = vector.shape_cast %43 : vector<2x8xf32> to vector<2x8x1xf32>
    %45 = vector.broadcast %44 : vector<2x8x1xf32> to vector<2x8x8xf32>
    %46 = arith.subf %42, %45 : vector<2x8x8xf32>
    %47 = math.exp %46 : vector<2x8x8xf32>
    %cst_13 = arith.constant dense<0.000000e+00> : vector<2x8xf32>
    %48 = vector.multi_reduction <add>, %47, %cst_13 [2] : vector<2x8x8xf32> to vector<2x8xf32>
    %49 = vector.shape_cast %48 : vector<2x8xf32> to vector<2x8x1xf32>
    %50 = tpu.reciprocal %49 {approx = true} : vector<2x8x1xf32> -> vector<2x8x1xf32>
    %51 = vector.broadcast %50 : vector<2x8x1xf32> to vector<2x8x8xf32>
    %52 = arith.mulf %47, %51 : vector<2x8x8xf32>
    %53 = arith.truncf %52 : vector<2x8x8xf32> to vector<2x8x8xbf16>
    "tpu.trace_start"() <{level = 10 : i32, message = "bqk,bkd->bqd"}> : () -> ()
    %cst_14 = arith.constant dense<0.000000e+00> : vector<2x8x8xf32>
    %54 = tpu.matmul %53, %41, %cst_14 {dimension_numbers = #tpu.dot_dimension_numbers<[2], [1], [1], [2], [0, 0, 0, 1, 1, 2], [0], [0]>} : vector<2x8x8xbf16>, vector<2x8x8xbf16>, vector<2x8x8xf32> -> vector<2x8x8xf32>
    "tpu.trace_stop"() : () -> ()
    %55 = arith.truncf %54 : vector<2x8x8xf32> to vector<2x8x8xbf16>
    %56 = vector.extract_strided_slice %4 {offsets = [0, 0, 24], sizes = [2, 8, 8], strides = [1, 1, 1]} : vector<2x8x96xbf16> to vector<2x8x8xbf16>
    %57 = vector.extract_strided_slice %4 {offsets = [0, 0, 56], sizes = [2, 8, 8], strides = [1, 1, 1]} : vector<2x8x96xbf16> to vector<2x8x8xbf16>
    %58 = vector.extract_strided_slice %4 {offsets = [0, 0, 88], sizes = [2, 8, 8], strides = [1, 1, 1]} : vector<2x8x96xbf16> to vector<2x8x8xbf16>
    "tpu.trace_start"() <{level = 10 : i32, message = "bqd,bkd->bqk"}> : () -> ()
    %cst_15 = arith.constant dense<0.000000e+00> : vector<2x8x8xf32>
    %59 = tpu.matmul %56, %57, %cst_15 {dimension_numbers = #tpu.dot_dimension_numbers<[2], [2], [1], [1], [0, 0, 0, 1, 1, 1], [0], [0]>} : vector<2x8x8xbf16>, vector<2x8x8xbf16>, vector<2x8x8xf32> -> vector<2x8x8xf32>
    "tpu.trace_stop"() : () -> ()
    %cst_16 = arith.constant dense<0xFF800000> : vector<2x8xf32>
    %60 = vector.multi_reduction <maximumf>, %59, %cst_16 [2] : vector<2x8x8xf32> to vector<2x8xf32>
    %61 = vector.shape_cast %60 : vector<2x8xf32> to vector<2x8x1xf32>
    %62 = vector.broadcast %61 : vector<2x8x1xf32> to vector<2x8x8xf32>
    %63 = arith.subf %59, %62 : vector<2x8x8xf32>
    %64 = math.exp %63 : vector<2x8x8xf32>
    %cst_17 = arith.constant dense<0.000000e+00> : vector<2x8xf32>
    %65 = vector.multi_reduction <add>, %64, %cst_17 [2] : vector<2x8x8xf32> to vector<2x8xf32>
    %66 = vector.shape_cast %65 : vector<2x8xf32> to vector<2x8x1xf32>
    %67 = tpu.reciprocal %66 {approx = true} : vector<2x8x1xf32> -> vector<2x8x1xf32>
    %68 = vector.broadcast %67 : vector<2x8x1xf32> to vector<2x8x8xf32>
    %69 = arith.mulf %64, %68 : vector<2x8x8xf32>
    %70 = arith.truncf %69 : vector<2x8x8xf32> to vector<2x8x8xbf16>
    "tpu.trace_start"() <{level = 10 : i32, message = "bqk,bkd->bqd"}> : () -> ()
    %cst_18 = arith.constant dense<0.000000e+00> : vector<2x8x8xf32>
    %71 = tpu.matmul %70, %58, %cst_18 {dimension_numbers = #tpu.dot_dimension_numbers<[2], [1], [1], [2], [0, 0, 0, 1, 1, 2], [0], [0]>} : vector<2x8x8xbf16>, vector<2x8x8xbf16>, vector<2x8x8xf32> -> vector<2x8x8xf32>
    "tpu.trace_stop"() : () -> ()
    %72 = arith.truncf %71 : vector<2x8x8xf32> to vector<2x8x8xbf16>
    %73 = tpu.concatenate %21, %38, %55, %72 in 2 : vector<2x8x8xbf16>, vector<2x8x8xbf16>, vector<2x8x8xbf16>, vector<2x8x8xbf16> -> vector<2x8x32xbf16>
    %c0_19 = arith.constant 0 : index
    %c0_20 = arith.constant 0 : index
    %c0_21 = arith.constant 0 : index
    %74 = vector.load %arg3[%c0_19, %c0_20, %c0_21] : memref<2x8x32xbf16, #tpu.memory_space<vmem>>, vector<2x8x32xbf16>
    tpu.vector_store %arg3[%c0_19, %c0_20, %c0_21], %73 {strides = array<i32>} : memref<2x8x32xbf16, #tpu.memory_space<vmem>>, vector<2x8x32xbf16>,
    return
  }
  func.func @transform_0(%arg0: i32) -> (i32, i32) {
    %c0_i32 = arith.constant 0 : i32
    %c0_i32_0 = arith.constant 0 : i32
    return %arg0, %c0_i32 : i32, i32
  }
  func.func @transform_1(%arg0: i32) -> (i32, i32) {
    %c0_i32 = arith.constant 0 : i32
    %c0_i32_0 = arith.constant 0 : i32
    %c0_i32_1 = arith.constant 0 : i32
    return %c0_i32, %c0_i32_0 : i32, i32
  }
  func.func @transform_2(%arg0: i32) -> (i32, i32, i32) {
    %c0_i32 = arith.constant 0 : i32
    %c0_i32_0 = arith.constant 0 : i32
    %c0_i32_1 = arith.constant 0 : i32
    return %arg0, %c0_i32, %c0_i32_0 : i32, i32, i32
  }
}

</mosaic_0001>

<bundles_post_ra>
// kernel: tpu_custom_call.1
= control target key start
LH: loop header
LB: loop body
LE: loop exit
PB: predicated region body
PF: predicated region fallthrough
CT: control target
= control target key end

     0   :  { %7 = vsyncpa [#allocation3], 0  ;;  %s1539_s0 = inlined_call_operand.hbm [shape: bf16[16,32], index: 0, kind: input, shape index: {}]   ;;  %s1540_s1 = inlined_call_operand.hbm [shape: bf16[32,96], index: 1, kind: input, shape index: {}]   ;;  %s1541_s2 = inlined_call_operand.hbm [shape: bf16[2,8,32], index: 2, kind: output, shape index: {}]  }
   0x1   :  { %8 = vsyncpa [#allocation6], 0 }
   0x2   :  { %9 = vsyncpa [#allocation4], 0  ;;  %s1336_s9 = smov [#allocation2]  }
   0x3   :  { %s15_s10 = sshll.u32 %s1336_s9, 4  ;;  %s16_s10 = int_to_ptr.vmem [resolvable:$true] %s15_s10 }
   0x4   :  { %s1278_s11 = scalar_lea.vmem %s16_s10, 128  ;;  %p1283_p1 = scmp.lt.s32.totalorder %s16_s10, %s16_s10 }
   0x5   :  { %p1279_p0 = scmp.ne.s32.totalorder %s16_s10, %s1278_s11  ;;  %p1284_p2 = scmp.lt.s32.totalorder %s1278_s11, %s1278_s11 }
   0x7   :  { %p1285_p3 = por %p1284_p2, %p1283_p1 }
   0x9   :  { %p1286_p4 = pnand %p1285_p3, %p1279_p0 }
   0xb   :  { %1289 = shalt.err (!%p1286_p4)
}
   0xc   :  { %s1337_s12 = smov 64   ;;  %s1338_s13 = smov 4  }
   0xd   :  { %21 = dma.hbm_to_vmem [thread:$0]  %s1539_s0, 128, %s16_s10, [#allocation3], %s1337_s12, %s1337_s12, %s1338_s13  }
   0xe   :  { %s1339_s16 = smov [#allocation5]  }
   0xf   :  { %s27_s17 = sshll.u32 %s1339_s16, 4  ;;  %s28_s17 = int_to_ptr.vmem [resolvable:$true] %s27_s17 }
  0x10   :  { %s1298_s18 = scalar_lea.vmem %s28_s17, 256  ;;  %p1303_p6 = scmp.lt.s32.totalorder %s28_s17, %s28_s17 }
  0x11   :  { %p1299_p5 = scmp.ne.s32.totalorder %s28_s17, %s1298_s18  ;;  %p1304_p7 = scmp.lt.s32.totalorder %s1298_s18, %s1298_s18 }
  0x13   :  { %p1305_p8 = por %p1304_p7, %p1303_p6 }
  0x15   :  { %p1306_p9 = pnand %p1305_p8, %p1299_p5 }
  0x17   :  { %1309 = shalt.err (!%p1306_p9)
}
  0x18   :  { %33 = dma.hbm_to_vmem [thread:$0]  %s1540_s1, 256, %s28_s17, [#allocation6], %s1337_s12, %s1337_s12, %s1338_s13  }
  0x19   :  { %1330 = dma.done.wait [#allocation3], 128  }
  0x1a   :  { %1331 = vsyncadd [#allocation3], 4294967168 }
  0x1b   :  { %1332 = dma.done.wait [#allocation6], 256  }
  0x1c   :  { %1333 = vsyncadd [#allocation6], 4294967040  ;;  %v1340_v0 = vmov 0.0   ;;  %vm1341_vm0 = vmmov 0   ;;  %v1235_v1 = vld [vmem:[#allocation5 + $0x8] sm:$0xff]   ;;  %v1236_v2 = vld [vmem:[#allocation5] sm:$0xff]  }
  0x1d   :  { %1111 = vmatprep.subr.bf16.mxu0 %v1340_v0  ;;  %1115 = vmatprep.mubr.msk.bf16.mxu0 %vm1341_vm0, %v1340_v0  ;;  %v1237_v3 = vld [vmem:[#allocation2] sm:$0xff]   ;;  %vm64_vm1 = vcmask 261120   ;;  %s1342_s0 = smov 96   ;;  %vm114_vm2 = vcmask 64512   ;;  %s1343_s1 = smov 88   ;;  %vm239_vm3 = vcmask 1043456  }
  0x1e   :  { %1119 = vmatprep.subr.bf16.mxu1 %v1340_v0  ;;  %1121 = vmatprep.mubr.msk.bf16.mxu1 %vm1341_vm0, %v1340_v0  ;;  %s1344_s21 = smov 120   ;;  %s1345_s22 = smov 56   ;;  %vm1028_vm4 = vcmask 195584   ;;  %vm1023_vm5 = vcmask 130048   ;;  %vm1035_vm6 = vcmask 257024  }
  0x1f   :  { %1112 = vmatpush3.bf16.msra.mxu0 %v1235_v1  ;;  %s1346_s23 = smov 80   ;;  %s1347_s24 = smov 112  }
  0x20   :  { %1113 = vmatprep.subr.bf16.mxu0 %v1340_v0  ;;  %s1348_s25 = smov 48   ;;  %s1349_s26 = smov 72  }
  0x21   :  { %s1350_s27 = smov 104   ;;  %s1351_s28 = smov 40  }
  0x22   :  { %s1352_s29 = smov 8   ;;  %s1353_s30 = smov 16  }
  0x23   :  { %1114 = vmatpush3.bf16.msra.mxu0 %v1236_v2  ;;  %s1354_s3 = smov 24   ;;  %s1355_s4 = smov [#allocation7]  }
  0x24   :  { %1125 = vmatprep.subr.bf16.mxu0 %v1340_v0  ;;  %s1043_s5 = sshll.u32 %s1355_s4, 4  ;;  %s1044_s5 = int_to_ptr.vmem [resolvable:$true] %s1043_s5 }
  0x25   :  { %s1310_s6 = scalar_lea.vmem %s1044_s5, 128  ;;  %p1315_p11 = scmp.lt.s32.totalorder %s1044_s5, %s1044_s5 }
  0x26   :  { %1116 = vmatmul.mubr.msk.bf16.vlgmr.msra.gmra.mxu0 %vm64_vm1, %v1237_v3  ;;  %p1311_p10 = scmp.ne.s32.totalorder %s1044_s5, %s1310_s6  ;;  %p1316_p12 = scmp.lt.s32.totalorder %s1310_s6, %s1310_s6 }
  0x27   :  { %1127 = vmatprep.mubr.msk.bf16.mxu0 %vm1341_vm0, %v1340_v0 }
  0x28   :  { %p1317_p13 = por %p1316_p12, %p1315_p11 }
  0x2a   :  { %p1318_p0 = pnand %p1317_p13, %p1311_p10 }
  0xe6   :  { %v102_v4 = vpop.f32.mrf.mxu0 }
  0xe7   :  { %v1393_v5 = vpack.c.bf16 %v102_v4, %v102_v4 }
  0xe8   :  { %v1117_v6 = vpop.f32.mrf.mxu0 }
  0xe9   :  { %112 = vrot.lane.b32.xlu0 %v1393_v5, %s1342_s0 }
  0xea   :  { %v105_v7 = vpop.f32.mrf.mxu0 }
  0xeb   :  { %v1396_v8 = vpack.c.bf16 %v105_v7, %v105_v7 }
  0xec   :  { %v1118_v9 = vpop.f32.mrf.mxu0 }
  0xed   :  { %162 = vrot.lane.b32.xlu0 %v1396_v8, %s1342_s0 }
 0x15b   :  { %v113_v10 = vpop.permute.xlu0 %112 }
 0x15c   :  { %v119_v11 = vsel %vm114_vm2, %v113_v10, 0 }
 0x15d   :  { %1120 = vmatpush3.bf16.xpose.msra.mxu1 %v119_v11 }
 0x15e   :  { %1131 = vmatprep.subr.bf16.mxu1 %v1340_v0 }
 0x15f   :  { %v163_v12 = vpop.permute.xlu0 %162 }
 0x160   :  { %v168_v13 = vsel %vm114_vm2, %v163_v12, 0 }
 0x161   :  { %1126 = vmatpush3.bf16.xpose.msra.mxu0 %v168_v13 }
 0x162   :  { %1137 = vmatprep.subr.bf16.mxu0 %v1340_v0 }
 0x164   :  { %1122 = vmatmul.mubr.msk.bf16.vlgmr.msra.gmra.mxu1 %vm114_vm2, %v1393_v5 }
 0x165   :  { %1133 = vmatprep.mubr.msk.bf16.mxu1 %vm1341_vm0, %v1340_v0 }
 0x168   :  { %1128 = vmatmul.mubr.msk.bf16.vlgmr.msra.gmra.mxu0 %vm114_vm2, %v1396_v8 }
 0x169   :  { %1139 = vmatprep.mubr.msk.bf16.mxu0 %vm1341_vm0, %v1340_v0 }
 0x224   :  { %v155_v14 = vpop.f32.mrf.mxu1 }
 0x225   :  { %v210_v15 = vsel %vm114_vm2, %v155_v14, -inf }
 0x226   :  { %211 = vmax.xlane.f32.xlu1 %v210_v15  ;;  %v1123_v16 = vpop.f32.mrf.mxu1 }
 0x228   :  { %v158_v17 = vpop.f32.mrf.mxu1  ;;  %v204_v18 = vpop.f32.mrf.mxu0 }
 0x229   :  { %v213_v19 = vsel %vm114_vm2, %v204_v18, -inf }
 0x22a   :  { %v1124_v20 = vpop.f32.mrf.mxu1  ;;  %214 = vmax.xlane.f32.xlu1 %v213_v19  ;;  %v1129_v21 = vpop.f32.mrf.mxu0 }
 0x22c   :  { %v207_v22 = vpop.f32.mrf.mxu0 }
 0x22e   :  { %v1130_v23 = vpop.f32.mrf.mxu0 }
 0x23b   :  { %234 = vrot.lane.b32.xlu1 %v1393_v5, %s1337_s12 }
 0x23f   :  { %283 = vrot.lane.b32.xlu1 %v1396_v8, %s1337_s12 }
 0x243   :  { %335 = vrot.lane.b32.xlu1 %v1393_v5, %s1343_s1 }
 0x2af   :  { %v212_v24 = vpop.xlane.xlu1 %211 }
 0x2b0   :  { %v216_v25 = vsub.f32 %v155_v14, %v212_v24 }
 0x2b2   :  { %v218_v26 = vmul.f32 1.442695, %v216_v25 }
 0x2b3   :  { %v215_v27 = vpop.xlane.xlu1 %214 }
 0x2b4   :  { %1238 = vpow2.f32 %v218_v26  ;;  %v217_v28 = vsub.f32 %v204_v18, %v215_v27 }
 0x2b6   :  { %v220_v29 = vmul.f32 1.442695, %v217_v28 }
 0x2b7   :  { %v235_v30 = vpop.permute.xlu1 %234 }
 0x2b8   :  { %1240 = vpow2.f32 %v220_v29  ;;  %v241_v31 = vsel %vm239_vm3, %v235_v30, 0 }
 0x2b9   :  { %1132 = vmatpush3.bf16.msra.mxu1 %v241_v31 }
 0x2ba   :  { %1143 = vmatprep.subr.bf16.mxu1 %v1340_v0 }
 0x2bb   :  { %v284_v32 = vpop.permute.xlu1 %283 }
 0x2bc   :  { %v289_v33 = vsel %vm239_vm3, %v284_v32, 0 }
 0x2bd   :  { %1138 = vmatpush3.bf16.msra.mxu0 %v289_v33 }
 0x2be   :  { %1149 = vmatprep.subr.bf16.mxu0 %v1340_v0 }
 0x2bf   :  { %v336_v38 = vpop.permute.xlu1 %335 }
 0x2c0   :  { %v341_v45 = vsel %vm114_vm2, %v336_v38, 0 }
 0x2c1   :  { %v1239_v34 = vpop.eup %1238 }
 0x2c2   :  { %v222_v35 = vsel %vm114_vm2, %v1239_v34, 0.0 }
 0x2c3   :  { %223 = vadd.xlane.f32.xlu0 %v222_v35 }
 0x2c5   :  { %v1241_v36 = vpop.eup %1240 }
 0x2c6   :  { %v225_v37 = vsel %vm114_vm2, %v1241_v36, 0.0 }
 0x2c7   :  { %226 = vadd.xlane.f32.xlu1 %v225_v37 }
 0x2d8   :  { %385 = vrot.lane.b32.xlu1 %v1396_v8, %s1343_s1 }
 0x2d9   :  { %333 = vrot.lane.b32.xlu0 %v1393_v5, %s1344_s21 }
 0x2dc   :  { %383 = vrot.lane.b32.xlu1 %v1396_v8, %s1344_s21 }
 0x34c   :  { %v224_v39 = vpop.xlane.xlu0 %223 }
 0x34d   :  { %1242 = vrcp.f32 %v224_v39 }
 0x350   :  { %v227_v40 = vpop.xlane.xlu1 %226  ;;  %v334_v50 = vpop.permute.xlu0 %333 }
 0x351   :  { %1244 = vrcp.f32 %v227_v40 }
 0x354   :  { %v386_v47 = vpop.permute.xlu1 %385 }
 0x355   :  { %v391_v49 = vsel %vm114_vm2, %v386_v47, 0 }
 0x358   :  { %v384_v51 = vpop.permute.xlu1 %383 }
 0x35a   :  { %v1243_v41 = vpop.eup %1242 }
 0x35b   :  { %v230_v42 = vmul.f32 %v1243_v41, %v1239_v34 }
 0x35d   :  { %v232_v43 = vpack.c.bf16 %v230_v42, %v230_v42 }
 0x35e   :  { %v1245_v44 = vpop.eup %1244 }
 0x35f   :  { %1134 = vmatmul.mubr.msk.bf16.vlgmr.msra.gmra.mxu1 %vm114_vm2, %v232_v43  ;;  %v231_v46 = vmul.f32 %v1245_v44, %v1241_v36 }
 0x360   :  { %1144 = vmatpush3.bf16.xpose.msra.mxu1 %v341_v45  ;;  %1145 = vmatprep.mubr.msk.bf16.mxu1 %vm1341_vm0, %v1340_v0 }
 0x361   :  { %v233_v48 = vpack.c.bf16 %v231_v46, %v231_v46  ;;  %1155 = vmatprep.subr.bf16.mxu1 %v1340_v0 }
 0x363   :  { %1140 = vmatmul.mubr.msk.bf16.vlgmr.msra.gmra.mxu0 %vm114_vm2, %v233_v48 }
 0x364   :  { %1150 = vmatpush3.bf16.xpose.msra.mxu0 %v391_v49  ;;  %1151 = vmatprep.mubr.msk.bf16.mxu0 %vm1341_vm0, %v1340_v0 }
 0x365   :  { %1161 = vmatprep.subr.bf16.mxu0 %v1340_v0 }
 0x367   :  { %1146 = vmatmul.mubr.msk.bf16.vlgmr.msra.gmra.mxu1 %vm114_vm2, %v334_v50 }
 0x368   :  { %1157 = vmatprep.mubr.msk.bf16.mxu1 %vm1341_vm0, %v1340_v0 }
 0x36b   :  { %1152 = vmatmul.mubr.msk.bf16.vlgmr.msra.gmra.mxu0 %vm114_vm2, %v384_v51 }
 0x36c   :  { %1163 = vmatprep.mubr.msk.bf16.mxu0 %vm1341_vm0, %v1340_v0 }
 0x41f   :  { %v1443_v52 = vpop.f32.mrf.mxu1 }
 0x421   :  { %v1135_v53 = vpop.f32.mrf.mxu1 }
 0x423   :  { %v280_v54 = vpop.f32.mrf.mxu1  ;;  %v1445_v55 = vpop.f32.mrf.mxu0 }
 0x425   :  { %v1136_v56 = vpop.f32.mrf.mxu1  ;;  %v1141_v57 = vpop.f32.mrf.mxu0 }
 0x427   :  { %v328_v58 = vpop.f32.mrf.mxu0  ;;  %v377_v59 = vpop.f32.mrf.mxu1 }
 0x428   :  { %v433_v60 = vsel %vm114_vm2, %v377_v59, -inf }
 0x429   :  { %434 = vmax.xlane.f32.xlu1 %v433_v60  ;;  %v1142_v61 = vpop.f32.mrf.mxu0  ;;  %v1147_v62 = vpop.f32.mrf.mxu1 }
 0x42b   :  { %v380_v63 = vpop.f32.mrf.mxu1  ;;  %v427_v1 = vpop.f32.mrf.mxu0 }
 0x42c   :  { %v436_v2 = vsel %vm114_vm2, %v427_v1, -inf }
 0x42d   :  { %v1148_v3 = vpop.f32.mrf.mxu1  ;;  %437 = vmax.xlane.f32.xlu0 %v436_v2  ;;  %v1153_v4 = vpop.f32.mrf.mxu0 }
 0x42f   :  { %v430_v6 = vpop.f32.mrf.mxu0 }
 0x431   :  { %v1154_v7 = vpop.f32.mrf.mxu0 }
 0x43a   :  { %457 = vrot.lane.b32.xlu1 %v1393_v5, %s1345_s22 }
 0x43e   :  { %557 = vrot.lane.b32.xlu1 %v1393_v5, %s1346_s23 }
 0x443   :  { %505 = vrot.lane.b32.xlu0 %v1396_v8, %s1345_s22 }
 0x447   :  { %555 = vrot.lane.b32.xlu0 %v1393_v5, %s1347_s24 }
 0x4b2   :  { %v435_v9 = vpop.xlane.xlu1 %434 }
 0x4b3   :  { %v439_v10 = vsub.f32 %v377_v59, %v435_v9 }
 0x4b5   :  { %v441_v11 = vmul.f32 1.442695, %v439_v10 }
 0x4b6   :  { %v458_v12 = vpop.permute.xlu1 %457  ;;  %v438_v13 = vpop.xlane.xlu0 %437 }
 0x4b7   :  { %1246 = vpow2.f32 %v441_v11  ;;  %v463_v14 = vsel %vm239_vm3, %v458_v12, 0  ;;  %v440_v15 = vsub.f32 %v427_v1, %v438_v13 }
 0x4b8   :  { %1156 = vmatpush3.bf16.msra.mxu1 %v463_v14 }
 0x4b9   :  { %v443_v16 = vmul.f32 1.442695, %v440_v15  ;;  %1167 = vmatprep.subr.bf16.mxu1 %v1340_v0 }
 0x4ba   :  { %v506_v17 = vpop.permute.xlu0 %505  ;;  %v558_v23 = vpop.permute.xlu1 %557 }
 0x4bb   :  { %1248 = vpow2.f32 %v443_v16  ;;  %v511_v18 = vsel %vm239_vm3, %v506_v17, 0  ;;  %v563_v30 = vsel %vm114_vm2, %v558_v23, 0 }
 0x4bc   :  { %1162 = vmatpush3.bf16.msra.mxu0 %v511_v18 }
 0x4bd   :  { %1173 = vmatprep.subr.bf16.mxu0 %v1340_v0 }
 0x4be   :  { %v556_v35 = vpop.permute.xlu0 %555 }
 0x4c4   :  { %v1247_v19 = vpop.eup %1246 }
 0x4c5   :  { %v445_v20 = vsel %vm114_vm2, %v1247_v19, 0.0 }
 0x4c6   :  { %446 = vadd.xlane.f32.xlu1 %v445_v20 }
 0x4c8   :  { %v1249_v21 = vpop.eup %1248 }
 0x4c9   :  { %v448_v22 = vsel %vm114_vm2, %v1249_v21, 0.0 }
 0x4ca   :  { %449 = vadd.xlane.f32.xlu1 %v448_v22 }
 0x4db   :  { %607 = vrot.lane.b32.xlu1 %v1396_v8, %s1346_s23 }
 0x4df   :  { %605 = vrot.lane.b32.xlu1 %v1396_v8, %s1347_s24 }
 0x54f   :  { %v447_v24 = vpop.xlane.xlu1 %446 }
 0x550   :  { %1250 = vrcp.f32 %v447_v24 }
 0x553   :  { %v450_v25 = vpop.xlane.xlu1 %449 }
 0x554   :  { %1252 = vrcp.f32 %v450_v25 }
 0x557   :  { %v608_v32 = vpop.permute.xlu1 %607 }
 0x558   :  { %v613_v34 = vsel %vm114_vm2, %v608_v32, 0 }
 0x55b   :  { %v606_v36 = vpop.permute.xlu1 %605 }
 0x55d   :  { %v1251_v26 = vpop.eup %1250 }
 0x55e   :  { %v453_v27 = vmul.f32 %v1251_v26, %v1247_v19 }
 0x560   :  { %v455_v28 = vpack.c.bf16 %v453_v27, %v453_v27 }
 0x561   :  { %v1253_v29 = vpop.eup %1252 }
 0x562   :  { %1158 = vmatmul.mubr.msk.bf16.vlgmr.msra.gmra.mxu1 %vm114_vm2, %v455_v28  ;;  %v454_v31 = vmul.f32 %v1253_v29, %v1249_v21 }
 0x563   :  { %1168 = vmatpush3.bf16.xpose.msra.mxu1 %v563_v30  ;;  %1169 = vmatprep.mubr.msk.bf16.mxu1 %vm1341_vm0, %v1340_v0 }
 0x564   :  { %v456_v33 = vpack.c.bf16 %v454_v31, %v454_v31  ;;  %1179 = vmatprep.subr.bf16.mxu1 %v1340_v0 }
 0x566   :  { %1164 = vmatmul.mubr.msk.bf16.vlgmr.msra.gmra.mxu0 %vm114_vm2, %v456_v33 }
 0x567   :  { %1174 = vmatpush3.bf16.xpose.msra.mxu0 %v613_v34  ;;  %1175 = vmatprep.mubr.msk.bf16.mxu0 %vm1341_vm0, %v1340_v0 }
 0x568   :  { %1185 = vmatprep.subr.bf16.mxu0 %v1340_v0 }
 0x56a   :  { %1170 = vmatmul.mubr.msk.bf16.vlgmr.msra.gmra.mxu1 %vm114_vm2, %v556_v35 }
 0x56b   :  { %1181 = vmatprep.mubr.msk.bf16.mxu1 %vm1341_vm0, %v1340_v0 }
 0x56e   :  { %1176 = vmatmul.mubr.msk.bf16.vlgmr.msra.gmra.mxu0 %vm114_vm2, %v606_v36 }
 0x56f   :  { %1187 = vmatprep.mubr.msk.bf16.mxu0 %vm1341_vm0, %v1340_v0 }
 0x622   :  { %v1477_v37 = vpop.f32.mrf.mxu1 }
 0x624   :  { %v1159_v38 = vpop.f32.mrf.mxu1 }
 0x626   :  { %v502_v39 = vpop.f32.mrf.mxu1  ;;  %v1479_v40 = vpop.f32.mrf.mxu0 }
 0x628   :  { %v1160_v41 = vpop.f32.mrf.mxu1  ;;  %v1165_v42 = vpop.f32.mrf.mxu0 }
 0x62a   :  { %v550_v43 = vpop.f32.mrf.mxu0  ;;  %v599_v44 = vpop.f32.mrf.mxu1 }
 0x62b   :  { %v655_v45 = vsel %vm114_vm2, %v599_v44, -inf  ;;  %v553_v43 = vpack.c.bf16 %v1477_v37, %v1477_v37 }
 0x62c   :  { %656 = vmax.xlane.f32.xlu0 %v655_v45  ;;  %v1166_v46 = vpop.f32.mrf.mxu0  ;;  %v1171_v47 = vpop.f32.mrf.mxu1 }
 0x62e   :  { %v602_v48 = vpop.f32.mrf.mxu1  ;;  %v649_v49 = vpop.f32.mrf.mxu0 }
 0x62f   :  { %v658_v50 = vsel %vm114_vm2, %v649_v49, -inf }
 0x630   :  { %v1172_v51 = vpop.f32.mrf.mxu1  ;;  %659 = vmax.xlane.f32.xlu1 %v658_v50  ;;  %v1177_v53 = vpop.f32.mrf.mxu0 }
 0x632   :  { %v652_v54 = vpop.f32.mrf.mxu0 }
 0x634   :  { %v1178_v56 = vpop.f32.mrf.mxu0 }
 0x641   :  { %679 = vrot.lane.b32.xlu1 %v1393_v5, %s1348_s25 }
 0x645   :  { %779 = vrot.lane.b32.xlu1 %v1393_v5, %s1349_s26 }
 0x649   :  { %829 = vrot.lane.b32.xlu1 %v1396_v8, %s1349_s26 }
 0x64d   :  { %827 = vrot.lane.b32.xlu1 %v1396_v8, %s1350_s27 }
 0x6b5   :  { %v657_v57 = vpop.xlane.xlu0 %656 }
 0x6b6   :  { %v661_v58 = vsub.f32 %v599_v44, %v657_v57  ;;  %v554_v44 = vpack.c.bf16 %v1479_v40, %v1479_v40 }
 0x6b8   :  { %v663_v59 = vmul.f32 1.442695, %v661_v58 }
 0x6b9   :  { %v660_v60 = vpop.xlane.xlu1 %659 }
 0x6ba   :  { %1254 = vpow2.f32 %v663_v59  ;;  %v662_v61 = vsub.f32 %v649_v49, %v660_v60 }
 0x6bc   :  { %v665_v62 = vmul.f32 1.442695, %v662_v61 }
 0x6bd   :  { %v680_v63 = vpop.permute.xlu1 %679 }
 0x6be   :  { %1256 = vpow2.f32 %v665_v62  ;;  %v685_v1 = vsel %vm239_vm3, %v680_v63, 0 }
 0x6bf   :  { %1180 = vmatpush3.bf16.msra.mxu1 %v685_v1 }
 0x6c0   :  { %1191 = vmatprep.subr.bf16.mxu1 %v1340_v0 }
 0x6c1   :  { %v780_v13 = vpop.permute.xlu1 %779 }
 0x6c2   :  { %v785_v17 = vsel %vm114_vm2, %v780_v13, 0 }
 0x6c5   :  { %v830_v19 = vpop.permute.xlu1 %829 }
 0x6c6   :  { %v835_v21 = vsel %vm114_vm2, %v830_v19, 0  ;;  %v331_v19 = vpack.c.bf16 %v1443_v52, %v1443_v52 }
 0x6c7   :  { %v1255_v2 = vpop.eup %1254 }
 0x6c8   :  { %v667_v3 = vsel %vm114_vm2, %v1255_v2, 0.0 }
 0x6c9   :  { %668 = vadd.xlane.f32.xlu0 %v667_v3  ;;  %v828_v23 = vpop.permute.xlu1 %827 }
 0x6cb   :  { %v1257_v4 = vpop.eup %1256 }
 0x6cc   :  { %v670_v6 = vsel %vm114_vm2, %v1257_v4, 0.0 }
 0x6cd   :  { %671 = vadd.xlane.f32.xlu0 %v670_v6 }
 0x6e3   :  { %727 = vrot.lane.b32.xlu0 %v1396_v8, %s1348_s25 }
 0x6e7   :  { %777 = vrot.lane.b32.xlu0 %v1393_v5, %s1350_s27 }
 0x752   :  { %v669_v7 = vpop.xlane.xlu0 %668 }
 0x753   :  { %1258 = vrcp.f32 %v669_v7 }
 0x756   :  { %v672_v9 = vpop.xlane.xlu0 %671 }
 0x757   :  { %1260 = vrcp.f32 %v672_v9 }
 0x75a   :  { %v728_v10 = vpop.permute.xlu0 %727 }
 0x75b   :  { %v733_v11 = vsel %vm239_vm3, %v728_v10, 0 }
 0x75c   :  { %1186 = vmatpush3.bf16.msra.mxu0 %v733_v11 }
 0x75d   :  { %1197 = vmatprep.subr.bf16.mxu0 %v1340_v0 }
 0x75e   :  { %v778_v22 = vpop.permute.xlu0 %777 }
 0x760   :  { %v1259_v12 = vpop.eup %1258 }
 0x761   :  { %v675_v14 = vmul.f32 %v1259_v12, %v1255_v2 }
 0x763   :  { %v677_v15 = vpack.c.bf16 %v675_v14, %v675_v14 }
 0x764   :  { %v1261_v16 = vpop.eup %1260 }
 0x765   :  { %1182 = vmatmul.mubr.msk.bf16.vlgmr.msra.gmra.mxu1 %vm114_vm2, %v677_v15  ;;  %v676_v18 = vmul.f32 %v1261_v16, %v1257_v4 }
 0x766   :  { %1192 = vmatpush3.bf16.xpose.msra.mxu1 %v785_v17  ;;  %1193 = vmatprep.mubr.msk.bf16.mxu1 %vm1341_vm0, %v1340_v0 }
 0x767   :  { %v678_v20 = vpack.c.bf16 %v676_v18, %v676_v18  ;;  %1203 = vmatprep.subr.bf16.mxu1 %v1340_v0 }
 0x769   :  { %1188 = vmatmul.mubr.msk.bf16.vlgmr.msra.gmra.mxu0 %vm114_vm2, %v678_v20 }
 0x76a   :  { %1198 = vmatpush3.bf16.xpose.msra.mxu0 %v835_v21  ;;  %1199 = vmatprep.mubr.msk.bf16.mxu0 %vm1341_vm0, %v1340_v0 }
 0x76b   :  { %1209 = vmatprep.subr.bf16.mxu0 %v1340_v0 }
 0x76d   :  { %1194 = vmatmul.mubr.msk.bf16.vlgmr.msra.gmra.mxu1 %vm114_vm2, %v778_v22 }
 0x76e   :  { %1205 = vmatprep.mubr.msk.bf16.mxu1 %vm1341_vm0, %v1340_v0 }
 0x771   :  { %1200 = vmatmul.mubr.msk.bf16.vlgmr.msra.gmra.mxu0 %vm114_vm2, %v828_v23 }
 0x772   :  { %1211 = vmatprep.mubr.msk.bf16.mxu0 %vm1341_vm0, %v1340_v0 }
 0x825   :  { %v721_v24 = vpop.f32.mrf.mxu1 }
 0x826   :  { %v775_v57 = vpack.c.bf16 %v721_v24, %v721_v24  ;;  %v332_v24 = vpack.c.bf16 %v1445_v55, %v1445_v55 }
 0x827   :  { %v1183_v25 = vpop.f32.mrf.mxu1 }
 0x829   :  { %v724_v26 = vpop.f32.mrf.mxu1  ;;  %v769_v27 = vpop.f32.mrf.mxu0 }
 0x82a   :  { %v776_v45 = vpack.c.bf16 %v769_v27, %v769_v27 }
 0x82b   :  { %v1184_v28 = vpop.f32.mrf.mxu1  ;;  %v1189_v29 = vpop.f32.mrf.mxu0 }
 0x82d   :  { %v772_v30 = vpop.f32.mrf.mxu0  ;;  %v821_v31 = vpop.f32.mrf.mxu1 }
 0x82e   :  { %v877_v32 = vsel %vm114_vm2, %v821_v31, -inf }
 0x82f   :  { %878 = vmax.xlane.f32.xlu0 %v877_v32  ;;  %v1190_v33 = vpop.f32.mrf.mxu0  ;;  %v1195_v34 = vpop.f32.mrf.mxu1 }
 0x831   :  { %v824_v35 = vpop.f32.mrf.mxu1  ;;  %v871_v36 = vpop.f32.mrf.mxu0 }
 0x832   :  { %v880_v38 = vsel %vm114_vm2, %v871_v36, -inf }
 0x833   :  { %v1196_v39 = vpop.f32.mrf.mxu1  ;;  %881 = vmax.xlane.f32.xlu1 %v880_v38  ;;  %v1201_v0 = vpop.f32.mrf.mxu0 }
 0x835   :  { %v874_v41 = vpop.f32.mrf.mxu0 }
 0x837   :  { %v1202_v42 = vpop.f32.mrf.mxu0 }
 0x844   :  { %901 = vrot.lane.b32.xlu1 %v1393_v5, %s1351_s28 }
 0x848   :  { %1001 = vrot.lane.b32.xlu1 %v553_v43, %s1352_s29 }
 0x84c   :  { %1003 = vrot.lane.b32.xlu1 %v554_v44, %s1352_s29 }
 0x850   :  { %1009 = vrot.lane.b32.xlu1 %v776_v45, %s1353_s30 }
 0x8b8   :  { %v879_v46 = vpop.xlane.xlu0 %878 }
 0x8b9   :  { %v883_v47 = vsub.f32 %v821_v31, %v879_v46 }
 0x8bb   :  { %v885_v48 = vmul.f32 1.442695, %v883_v47 }
 0x8bc   :  { %v882_v49 = vpop.xlane.xlu1 %881 }
 0x8bd   :  { %1262 = vpow2.f32 %v885_v48  ;;  %v884_v50 = vsub.f32 %v871_v36, %v882_v49 }
 0x8bf   :  { %v887_v51 = vmul.f32 1.442695, %v884_v50 }
 0x8c0   :  { %v902_v5 = vpop.permute.xlu1 %901 }
 0x8c1   :  { %1264 = vpow2.f32 %v887_v51  ;;  %v907_v37 = vsel %vm239_vm3, %v902_v5, 0 }
 0x8c2   :  { %1204 = vmatpush3.bf16.msra.mxu1 %v907_v37 }
 0x8c4   :  { %v1002_v16 = vpop.permute.xlu1 %1001 }
 0x8c5   :  { %v1019_v20 = vsel %vm114_vm2, %v331_v19, %v1002_v16 }
 0x8c8   :  { %v1004_v17 = vpop.permute.xlu1 %1003 }
 0x8c9   :  { %v1022_v26 = vsel %vm114_vm2, %v332_v24, %v1004_v17 }
 0x8ca   :  { %v1263_v53 = vpop.eup %1262 }
 0x8cb   :  { %v889_v54 = vsel %vm114_vm2, %v1263_v53, 0.0 }
 0x8cc   :  { %890 = vadd.xlane.f32.xlu0 %v889_v54  ;;  %v1010_v21 = vpop.permute.xlu1 %1009 }
 0x8cd   :  { %v1027_v27 = vsel %vm1023_vm5, %v1022_v26, %v1010_v21 }
 0x8ce   :  { %v1265_v40 = vpop.eup %1264 }
 0x8cf   :  { %v892_v56 = vsel %vm114_vm2, %v1265_v40, 0.0 }
 0x8d0   :  { %893 = vadd.xlane.f32.xlu0 %v892_v56 }
 0x8e6   :  { %949 = vrot.lane.b32.xlu0 %v1396_v8, %s1351_s28 }
 0x8ea   :  { %1007 = vrot.lane.b32.xlu0 %v775_v57, %s1353_s30 }
 0x955   :  { %v891_v58 = vpop.xlane.xlu0 %890 }
 0x956   :  { %1266 = vrcp.f32 %v891_v58 }
 0x959   :  { %v894_v59 = vpop.xlane.xlu0 %893 }
 0x95a   :  { %1268 = vrcp.f32 %v894_v59 }
 0x95d   :  { %v950_v60 = vpop.permute.xlu0 %949 }
 0x95e   :  { %v955_v61 = vsel %vm239_vm3, %v950_v60, 0 }
 0x95f   :  { %1210 = vmatpush3.bf16.msra.mxu0 %v955_v61 }
 0x961   :  { %v1008_v18 = vpop.permute.xlu0 %1007 }
 0x962   :  { %v1025_v22 = vsel %vm1023_vm5, %v1019_v20, %v1008_v18 }
 0x963   :  { %v1267_v62 = vpop.eup %1266 }
 0x964   :  { %v897_v63 = vmul.f32 %v1267_v62, %v1263_v53 }
 0x966   :  { %v899_v1 = vpack.c.bf16 %v897_v63, %v897_v63 }
 0x967   :  { %v1269_v2 = vpop.eup %1268 }
 0x968   :  { %1206 = vmatmul.mubr.msk.bf16.vlgmr.msra.gmra.mxu1 %vm114_vm2, %v899_v1  ;;  %v898_v3 = vmul.f32 %v1269_v2, %v1265_v40 }
 0x96a   :  { %v900_v4 = vpack.c.bf16 %v898_v3, %v898_v3 }
 0x96c   :  { %1212 = vmatmul.mubr.msk.bf16.vlgmr.msra.gmra.mxu0 %vm114_vm2, %v900_v4 }
 0xa28   :  { %v943_v8 = vpop.f32.mrf.mxu1 }
 0xa29   :  { %v997_v6 = vpack.c.bf16 %v943_v8, %v943_v8 }
 0xa2a   :  { %v1207_v7 = vpop.f32.mrf.mxu1 }
 0xa2b   :  { %1013 = vrot.lane.b32.xlu0 %v997_v6, %s1354_s3 }
 0xa2c   :  { %v946_v9 = vpop.f32.mrf.mxu1  ;;  %v991_v10 = vpop.f32.mrf.mxu0 }
 0xa2d   :  { %v998_v11 = vpack.c.bf16 %v991_v10, %v991_v10 }
 0xa2e   :  { %v1208_v12 = vpop.f32.mrf.mxu1  ;;  %v1213_v13 = vpop.f32.mrf.mxu0 }
 0xa2f   :  { %1015 = vrot.lane.b32.xlu1 %v998_v11, %s1354_s3 }
 0xa30   :  { %v994_v14 = vpop.f32.mrf.mxu0 }
 0xa32   :  { %v1214_v15 = vpop.f32.mrf.mxu0 }
 0xa9d   :  { %v1014_v23 = vpop.permute.xlu0 %1013 }
 0xa9e   :  { %v1030_v25 = vsel %vm1028_vm4, %v1025_v22, %v1014_v23 }
 0xa9f   :  { %1036 = vst.msk [vmem:[#allocation7] sm:$0xf] %vm1035_vm6, %v1030_v25 }
 0xaa1   :  { %v1016_v52 = vpop.permute.xlu1 %1015 }
 0xaa2   :  { %v1033_v28 = vsel %vm1028_vm4, %v1027_v27, %v1016_v52 }
 0xaa3   :  { %1037 = vst.msk [vmem:[#allocation7 + $0x4] sm:$0xf] %vm1035_vm6, %v1033_v28 }
 0xaa4   :  { %1321 = shalt.err (!%p1318_p0)
}
 0xaa5   :  { %1049 = dma.vmem_to_hbm [thread:$0]  %s1044_s5, 128, %s1541_s2, [#allocation4], %s1337_s12, %s1337_s12, %s1338_s13  }
 0xaa6   :  { %1334 = dma.done.wait [#allocation4], 128  }
 0xaa7   :  { %1335 = vsyncadd [#allocation4], 4294967168 }
 0xaa8   :  { %1053 = vsyncpa [#allocation3], 1 }
 0xaa9   :  { %1054 = vsyncpa [#allocation6], 1 }
 0xaaa   :  { %1055 = vsyncpa [#allocation4], 1 }

</bundles_post_ra>
